<compile_context>
chip_gen: v7x
topology: tpu7x:2x2x1
jax: 0.10.0
libtpu: 0.0.40
codegen_flags: <defaults>
</compile_context>

<pallas_src>
import functools
import math

import jax
import jax.numpy as jnp
from jax.experimental import pallas as pl
from jax.experimental.pallas import tpu as pltpu


# ---------------------------------------------------------------------------
# helpers
# ---------------------------------------------------------------------------
def _tile(dim: int, preferred: int, align: int) -> int:
    """Largest legal tile <= preferred that divides dim (full-extent fallback)."""
    if dim <= preferred:
        return dim
    t = max(align, (preferred // align) * align)
    while t > align and dim % t != 0:
        t -= align
    return t if dim % t == 0 else dim


def _rope_tables(seq_len: int, dim: int, base: float):
    """cos/sin tables [T, dim], matching RotaryPositionalEmbedding."""
    inv_freq = 1.0 / (base ** (jnp.arange(0, dim, 2, dtype=jnp.float32) / dim))
    freqs = jnp.arange(seq_len, dtype=jnp.float32)[:, None] * inv_freq[None, :]
    emb = jnp.concatenate([freqs, freqs], axis=-1)  # [T, dim]
    return jnp.cos(emb), jnp.sin(emb)


# ---------------------------------------------------------------------------
# Kernel 1: rotary position embedding for q and k (fused, elementwise)
#   inputs reshaped to [T, B*h, d] so the rotate_half split is on the full
#   (last) block dim — no in-kernel reshapes needed.
# ---------------------------------------------------------------------------
def _rope_kernel(q_ref, k_ref, cos_ref, sin_ref, qo_ref, ko_ref):
    cos = cos_ref[...]                       # (tt, 1, d) -> broadcasts over B*h
    sin = sin_ref[...]
    half = q_ref.shape[-1] // 2

    def _rope(x):
        x1 = x[..., :half]
        x2 = x[..., half:]
        rot = jnp.concatenate([-x2, x1], axis=-1)   # rotate_half
        return x * cos + rot * sin

    qo_ref[...] = _rope(q_ref[...]).astype(qo_ref.dtype)
    ko_ref[...] = _rope(k_ref[...]).astype(ko_ref.dtype)


def apply_rope(q_tbc, k_tbc, cos_t_d, sin_t_d, n_head, *, tt_pref=256):
    T, B, C = q_tbc.shape
    d = C // n_head
    BH = B * n_head
    q3 = q_tbc.reshape(T, BH, d)
    k3 = k_tbc.reshape(T, BH, d)
    cos3 = cos_t_d.reshape(T, 1, d).astype(q_tbc.dtype)
    sin3 = sin_t_d.reshape(T, 1, d).astype(q_tbc.dtype)

    tt = _tile(T, tt_pref, 8)
    grid = (T // tt,)

    qo, ko = pl.pallas_call(
        _rope_kernel,
        out_shape=(jax.ShapeDtypeStruct((T, BH, d), q_tbc.dtype),
                   jax.ShapeDtypeStruct((T, BH, d), k_tbc.dtype)),
        grid_spec=pltpu.PrefetchScalarGridSpec(
            num_scalar_prefetch=0,
            grid=grid,
            in_specs=[
                pl.BlockSpec((tt, BH, d), lambda i: (i, 0, 0)),
                pl.BlockSpec((tt, BH, d), lambda i: (i, 0, 0)),
                pl.BlockSpec((tt, 1, d), lambda i: (i, 0, 0)),
                pl.BlockSpec((tt, 1, d), lambda i: (i, 0, 0)),
            ],
            out_specs=[
                pl.BlockSpec((tt, BH, d), lambda i: (i, 0, 0)),
                pl.BlockSpec((tt, BH, d), lambda i: (i, 0, 0)),
            ],
        ),
        compiler_params=pltpu.CompilerParams(
            dimension_semantics=("parallel",)),
    )(q3, k3, cos3, sin3)
    return qo.reshape(T, B, C), ko.reshape(T, B, C)


# ---------------------------------------------------------------------------
# Kernel 2: tiled linear  y = x @ W^T + b   (W stored pre-transposed [in, out])
# ---------------------------------------------------------------------------
def _linear_kernel(x_ref, w_ref, b_ref, o_ref, acc_ref):
    k = pl.program_id(2)

    @pl.when(k == 0)
    def _():
        acc_ref[...] = jnp.zeros_like(acc_ref)

    acc_ref[...] += jnp.dot(x_ref[...], w_ref[...],
                            preferred_element_type=jnp.float32)

    @pl.when(k == pl.num_programs(2) - 1)
    def _():
        o_ref[...] = (acc_ref[...] + b_ref[...].astype(jnp.float32)).astype(o_ref.dtype)


def linear_proj(x2d, w_t, bias_1n, *, tm_pref=256, tn_pref=256, tk_pref=512):
    """x2d: [R, K], w_t: [K, N] (pre-transposed), bias_1n: [1, N] -> [R, N]."""
    R, K = x2d.shape
    Kw, N = w_t.shape
    assert K == Kw

    # Pad rows to a sublane multiple so arbitrary B*T works (sliced back below).
    R_pad = -(-R // 8) * 8
    if R_pad != R:
        x2d = jnp.pad(x2d, ((0, R_pad - R), (0, 0)))

    tm = _tile(R_pad, tm_pref, 8)
    tn = _tile(N, tn_pref, 128)
    tk = _tile(K, tk_pref, 128)
    grid = (R_pad // tm, N // tn, K // tk)

    out = pl.pallas_call(
        _linear_kernel,
        out_shape=jax.ShapeDtypeStruct((R_pad, N), x2d.dtype),
        grid_spec=pltpu.PrefetchScalarGridSpec(
            num_scalar_prefetch=0,
            grid=grid,
            in_specs=[
                pl.BlockSpec((tm, tk), lambda i, j, k: (i, k)),
                pl.BlockSpec((tk, tn), lambda i, j, k: (k, j)),
                pl.BlockSpec((1, tn), lambda i, j, k: (0, j)),
            ],
            out_specs=pl.BlockSpec((tm, tn), lambda i, j, k: (i, j)),
            scratch_shapes=[pltpu.VMEM((tm, tn), jnp.float32)],
        ),
        compiler_params=pltpu.CompilerParams(
            dimension_semantics=("parallel", "parallel", "arbitrary"),
            vmem_limit_bytes=48 * 1024 * 1024),
    )(x2d, w_t, bias_1n)
    return out[:R] if R_pad != R else out


# ---------------------------------------------------------------------------
# Kernel 3: fused attention (flash-style online softmax) per (batch*head)
#   q,k,v: [B*h, T, d] -> out [B*h, T, d]; scores never hit HBM.
# ---------------------------------------------------------------------------
def _flash_attn_kernel(q_ref, k_ref, v_ref, o_ref, m_sc, l_sc, acc_sc, *, scale):
    ki = pl.program_id(2)

    @pl.when(ki == 0)
    def _():
        m_sc[...] = jnp.full_like(m_sc, -jnp.inf)
        l_sc[...] = jnp.zeros_like(l_sc)
        acc_sc[...] = jnp.zeros_like(acc_sc)

    q = q_ref[...] * scale                                     # (1, tq, d)
    s = jnp.einsum('bqd,bkd->bqk', q, k_ref[...],
                   preferred_element_type=jnp.float32)         # (1, tq, tk)

    m_prev = m_sc[...]
    m_new = jnp.maximum(m_prev, s.max(axis=-1, keepdims=True))
    alpha = jnp.exp(m_prev - m_new)
    p = jnp.exp(s - m_new)
    l_sc[...] = alpha * l_sc[...] + p.sum(axis=-1, keepdims=True)
    acc_sc[...] = alpha * acc_sc[...] + jnp.einsum(
        'bqk,bkd->bqd', p.astype(v_ref.dtype), v_ref[...],
        preferred_element_type=jnp.float32)
    m_sc[...] = m_new

    @pl.when(ki == pl.num_programs(2) - 1)
    def _():
        o_ref[...] = (acc_sc[...] *
                      pl.reciprocal(l_sc[...], approx=True)).astype(o_ref.dtype)


def fused_attention(q_bhtd, k_bhtd, v_bhtd, scale, *, tq_pref=128, tk_pref=128):
    BH, T, d = q_bhtd.shape
    tq = _tile(T, tq_pref, 8)
    tk = _tile(T, tk_pref, 8)
    grid = (BH, T // tq, T // tk)

    return pl.pallas_call(
        functools.partial(_flash_attn_kernel, scale=scale),
        out_shape=jax.ShapeDtypeStruct((BH, T, d), q_bhtd.dtype),
        grid_spec=pltpu.PrefetchScalarGridSpec(
            num_scalar_prefetch=0,
            grid=grid,
            in_specs=[
                pl.BlockSpec((1, tq, d), lambda b, qi, ki: (b, qi, 0)),
                pl.BlockSpec((1, tk, d), lambda b, qi, ki: (b, ki, 0)),
                pl.BlockSpec((1, tk, d), lambda b, qi, ki: (b, ki, 0)),
            ],
            out_specs=pl.BlockSpec((1, tq, d), lambda b, qi, ki: (b, qi, 0)),
            scratch_shapes=[
                pltpu.VMEM((1, tq, 1), jnp.float32),   # running max
                pltpu.VMEM((1, tq, 1), jnp.float32),   # running denom
                pltpu.VMEM((1, tq, d), jnp.float32),   # running numerator
            ],
        ),
        compiler_params=pltpu.CompilerParams(
            dimension_semantics=("parallel", "parallel", "arbitrary"),
            vmem_limit_bytes=48 * 1024 * 1024),
    )(q_bhtd, k_bhtd, v_bhtd)


# ---------------------------------------------------------------------------
# Module wrapper
# ---------------------------------------------------------------------------
class RotaryPositionMultiHeadedAttentionPallas:
    def __init__(self, n_feat, n_head, dropout=0.0, precision="fp32",
                 rotary_emd_base=10000, *, key):
        assert n_feat % n_head == 0
        self.h = n_head
        self.d_k = n_feat // n_head
        self.base = float(rotary_emd_base)
        self.dropout_p = dropout
        # TODO(synk): dropout on attention probs is identity at inference (p unused here).
        # The reference forces precision = torch.float -> keep f32 parameters/compute.

        def make_linear(k):
            kw, kb = jax.random.split(k)
            bound = 1.0 / math.sqrt(n_feat)
            w = jax.random.uniform(kw, (n_feat, n_feat), jnp.float32, -bound, bound)
            b = jax.random.uniform(kb, (1, n_feat), jnp.float32, -bound, bound)
            return w.T, b                     # store W pre-transposed ONCE: [in, out]

        kq, kk, kv, ko = jax.random.split(key, 4)
        self.wq_t, self.bq = make_linear(kq)
        self.wk_t, self.bk = make_linear(kk)
        self.wv_t, self.bv = make_linear(kv)
        self.wo_t, self.bo = make_linear(ko)

    def __call__(self, query, key, value, key_padding_mask=None):
        # TODO(synk): key_padding_mask masking branch not implemented (None path only).
        assert key_padding_mask is None
        T, B, C = value.shape
        h, d = self.h, self.d_k

        cos, sin = _rope_tables(T, d, self.base)                 # [T, d]
        q_rope, k_rope = apply_rope(query, key, cos, sin, h)     # [T, B, C]

        def to_rows(x_tbc):                                      # -> [B*T, C]
            return x_tbc.transpose(1, 0, 2).reshape(B * T, C)

        q2 = linear_proj(to_rows(q_rope), self.wq_t, self.bq)
        k2 = linear_proj(to_rows(k_rope), self.wk_t, self.bk)
        v2 = linear_proj(to_rows(value), self.wv_t, self.bv)

        def to_heads(x2d):                                       # -> [B*h, T, d]
            return x2d.reshape(B, T, h, d).transpose(0, 2, 1, 3).reshape(B * h, T, d)

        ctx = fused_attention(to_heads(q2), to_heads(k2), to_heads(v2),
                              1.0 / math.sqrt(d))                # [B*h, T, d]

        ctx2 = ctx.reshape(B, h, T, d).transpose(0, 2, 1, 3).reshape(B * T, C)
        out = linear_proj(ctx2, self.wo_t, self.bo)              # [B*T, C]
        out = out.reshape(B, T, C).transpose(1, 0, 2)            # [T, B, C]
        return out, None


# ---------------------------------------------------------------------------
# Pure-JAX reference (mirrors the PyTorch module exactly)
# ---------------------------------------------------------------------------
def reference_forward(m, query, key, value):
    T, B, C = value.shape
    h, d = m.h, m.d_k
    cos, sin = _rope_tables(T, d, m.base)
    cos4 = cos[:, None, None, :]
    sin4 = sin[:, None, None, :]

    def rope(x):
        x4 = x.reshape(T, B, h, d)
        x1, x2 = x4[..., :d // 2], x4[..., d // 2:]
        rot = jnp.concatenate([-x2, x1], axis=-1)
        return (x4 * cos4 + rot * sin4).reshape(T, B, C)

    def lin(w_t, b, x):
        return x @ w_t + b

    qr, kr = rope(query), rope(key)
    q = lin(m.wq_t, m.bq, qr.transpose(1, 0, 2)).reshape(B, T, h, d).transpose(0, 2, 1, 3)
    k = lin(m.wk_t, m.bk, kr.transpose(1, 0, 2)).reshape(B, T, h, d).transpose(0, 2, 1, 3)
    v = lin(m.wv_t, m.bv, value.transpose(1, 0, 2)).reshape(B, T, h, d).transpose(0, 2, 1, 3)
    scores = jnp.einsum('bhqd,bhkd->bhqk', q, k) / math.sqrt(d)
    attn = jax.nn.softmax(scores, axis=-1)
    ctx = jnp.einsum('bhqk,bhkd->bhqd', attn, v).transpose(0, 2, 1, 3).reshape(B, T, C)
    out = lin(m.wo_t, m.bo, ctx)
    return out.transpose(1, 0, 2)


# ---------------------------------------------------------------------------
if __name__ == "__main__":
    T, B, C, H = 16, 2, 128, 4     # seq, batch, n_feat, n_head  (d_k = 32)
    key = jax.random.PRNGKey(0)
    kq, kk, kv, kp = jax.random.split(key, 4)
    query = jax.random.normal(kq, (T, B, C), jnp.float32)
    key_in = jax.random.normal(kk, (T, B, C), jnp.float32)
    value = jax.random.normal(kv, (T, B, C), jnp.float32)

    mha = RotaryPositionMultiHeadedAttentionPallas(
        C, H, dropout=0.0, precision="fp32", rotary_emd_base=10000, key=kp)

    out, extra = mha(query, key_in, value, key_padding_mask=None)
    jax.block_until_ready(out)

    ref = reference_forward(mha, query, key_in, value)
    assert out.shape == (T, B, C) and extra is None
    max_err = float(jnp.max(jnp.abs(out - ref)))
    assert jnp.allclose(out, ref, atol=5e-3, rtol=5e-3), f"max_err={max_err}"

    print("KERNEL_OK")
</pallas_src>

<mosaic_0001>
module attributes {stable_mosaic.version = 11 : i64} {
  func.func @_rope_kernel(%arg0: i32, %arg1: memref<16x8x32xf32, #tpu.memory_space<vmem>>, %arg2: memref<16x8x32xf32, #tpu.memory_space<vmem>>, %arg3: memref<16x1x32xf32, #tpu.memory_space<vmem>>, %arg4: memref<16x1x32xf32, #tpu.memory_space<vmem>>, %arg5: memref<16x8x32xf32, #tpu.memory_space<vmem>>, %arg6: memref<16x8x32xf32, #tpu.memory_space<vmem>>) attributes {dimension_semantics = [#tpu.dimension_semantics<parallel>], iteration_bounds = array<i64: 1>, scalar_prefetch = 0 : i64, scratch_operands = 0 : i64, tpu.core_type = #tpu.core_type<tc>, window_params = [{transform_indices = @transform_0, window_bounds = array<i64: 16, 8, 32>}, {transform_indices = @transform_1, window_bounds = array<i64: 16, 8, 32>}, {transform_indices = @transform_2, window_bounds = array<i64: 16, 1, 32>}, {transform_indices = @transform_3, window_bounds = array<i64: 16, 1, 32>}, {transform_indices = @transform_4, window_bounds = array<i64: 16, 8, 32>}, {transform_indices = @transform_5, window_bounds = array<i64: 16, 8, 32>}]} {
    %c0 = arith.constant 0 : index
    %c0_0 = arith.constant 0 : index
    %c0_1 = arith.constant 0 : index
    %0 = vector.load %arg3[%c0, %c0_0, %c0_1] : memref<16x1x32xf32, #tpu.memory_space<vmem>>, vector<16x1x32xf32>
    %c0_2 = arith.constant 0 : index
    %c0_3 = arith.constant 0 : index
    %c0_4 = arith.constant 0 : index
    %1 = vector.load %arg4[%c0_2, %c0_3, %c0_4] : memref<16x1x32xf32, #tpu.memory_space<vmem>>, vector<16x1x32xf32>
    %c0_5 = arith.constant 0 : index
    %c0_6 = arith.constant 0 : index
    %c0_7 = arith.constant 0 : index
    %2 = vector.load %arg1[%c0_5, %c0_6, %c0_7] : memref<16x8x32xf32, #tpu.memory_space<vmem>>, vector<16x8x32xf32>
    %3 = vector.extract_strided_slice %2 {offsets = [0, 0, 0], sizes = [16, 8, 16], strides = [1, 1, 1]} : vector<16x8x32xf32> to vector<16x8x16xf32>
    %4 = vector.extract_strided_slice %2 {offsets = [0, 0, 16], sizes = [16, 8, 16], strides = [1, 1, 1]} : vector<16x8x32xf32> to vector<16x8x16xf32>
    %cst = arith.constant 0.000000e+00 : f32
    %5 = vector.broadcast %cst : f32 to vector<16x8x16xf32>
    %6 = arith.subf %5, %4 : vector<16x8x16xf32>
    %7 = tpu.concatenate %6, %3 in 2 : vector<16x8x16xf32>, vector<16x8x16xf32> -> vector<16x8x32xf32>
    %8 = vector.broadcast %0 : vector<16x1x32xf32> to vector<16x8x32xf32>
    %9 = arith.mulf %2, %8 : vector<16x8x32xf32>
    %10 = vector.broadcast %1 : vector<16x1x32xf32> to vector<16x8x32xf32>
    %11 = arith.mulf %7, %10 : vector<16x8x32xf32>
    %12 = arith.addf %9, %11 : vector<16x8x32xf32>
    %c0_8 = arith.constant 0 : index
    %c0_9 = arith.constant 0 : index
    %c0_10 = arith.constant 0 : index
    %13 = vector.load %arg5[%c0_8, %c0_9, %c0_10] : memref<16x8x32xf32, #tpu.memory_space<vmem>>, vector<16x8x32xf32>
    tpu.vector_store %arg5[%c0_8, %c0_9, %c0_10], %12 {strides = array<i32>} : memref<16x8x32xf32, #tpu.memory_space<vmem>>, vector<16x8x32xf32>,
    %c0_11 = arith.constant 0 : index
    %c0_12 = arith.constant 0 : index
    %c0_13 = arith.constant 0 : index
    %14 = vector.load %arg2[%c0_11, %c0_12, %c0_13] : memref<16x8x32xf32, #tpu.memory_space<vmem>>, vector<16x8x32xf32>
    %15 = vector.extract_strided_slice %14 {offsets = [0, 0, 0], sizes = [16, 8, 16], strides = [1, 1, 1]} : vector<16x8x32xf32> to vector<16x8x16xf32>
    %16 = vector.extract_strided_slice %14 {offsets = [0, 0, 16], sizes = [16, 8, 16], strides = [1, 1, 1]} : vector<16x8x32xf32> to vector<16x8x16xf32>
    %cst_14 = arith.constant 0.000000e+00 : f32
    %17 = vector.broadcast %cst_14 : f32 to vector<16x8x16xf32>
    %18 = arith.subf %17, %16 : vector<16x8x16xf32>
    %19 = tpu.concatenate %18, %15 in 2 : vector<16x8x16xf32>, vector<16x8x16xf32> -> vector<16x8x32xf32>
    %20 = vector.broadcast %0 : vector<16x1x32xf32> to vector<16x8x32xf32>
    %21 = arith.mulf %14, %20 : vector<16x8x32xf32>
    %22 = vector.broadcast %1 : vector<16x1x32xf32> to vector<16x8x32xf32>
    %23 = arith.mulf %19, %22 : vector<16x8x32xf32>
    %24 = arith.addf %21, %23 : vector<16x8x32xf32>
    %c0_15 = arith.constant 0 : index
    %c0_16 = arith.constant 0 : index
    %c0_17 = arith.constant 0 : index
    %25 = vector.load %arg6[%c0_15, %c0_16, %c0_17] : memref<16x8x32xf32, #tpu.memory_space<vmem>>, vector<16x8x32xf32>
    tpu.vector_store %arg6[%c0_15, %c0_16, %c0_17], %24 {strides = array<i32>} : memref<16x8x32xf32, #tpu.memory_space<vmem>>, vector<16x8x32xf32>,
    return
  }
  func.func @transform_0(%arg0: i32) -> (i32, i32, i32) {
    %c0_i32 = arith.constant 0 : i32
    %c0_i32_0 = arith.constant 0 : i32
    %c0_i32_1 = arith.constant 0 : i32
    return %arg0, %c0_i32, %c0_i32_0 : i32, i32, i32
  }
  func.func @transform_1(%arg0: i32) -> (i32, i32, i32) {
    %c0_i32 = arith.constant 0 : i32
    %c0_i32_0 = arith.constant 0 : i32
    %c0_i32_1 = arith.constant 0 : i32
    return %arg0, %c0_i32, %c0_i32_0 : i32, i32, i32
  }
  func.func @transform_2(%arg0: i32) -> (i32, i32, i32) {
    %c0_i32 = arith.constant 0 : i32
    %c0_i32_0 = arith.constant 0 : i32
    %c0_i32_1 = arith.constant 0 : i32
    return %arg0, %c0_i32, %c0_i32_0 : i32, i32, i32
  }
  func.func @transform_3(%arg0: i32) -> (i32, i32, i32) {
    %c0_i32 = arith.constant 0 : i32
    %c0_i32_0 = arith.constant 0 : i32
    %c0_i32_1 = arith.constant 0 : i32
    return %arg0, %c0_i32, %c0_i32_0 : i32, i32, i32
  }
  func.func @transform_4(%arg0: i32) -> (i32, i32, i32) {
    %c0_i32 = arith.constant 0 : i32
    %c0_i32_0 = arith.constant 0 : i32
    %c0_i32_1 = arith.constant 0 : i32
    return %arg0, %c0_i32, %c0_i32_0 : i32, i32, i32
  }
  func.func @transform_5(%arg0: i32) -> (i32, i32, i32) {
    %c0_i32 = arith.constant 0 : i32
    %c0_i32_0 = arith.constant 0 : i32
    %c0_i32_1 = arith.constant 0 : i32
    return %arg0, %c0_i32, %c0_i32_0 : i32, i32, i32
  }
}

</mosaic_0001>

<bundles_post_ra>
// kernel: tpu_custom_call.1
= control target key start
LH: loop header
LB: loop body
LE: loop exit
PB: predicated region body
PF: predicated region fallthrough
CT: control target
= control target key end

     0   :  { %11 = vsyncpa [#allocation3], 0  ;;  %s1602_s0 = inlined_call_operand.hbm [shape: f32[16,8,32], index: 0, kind: input, shape index: {}]   ;;  %s1603_s1 = inlined_call_operand.hbm [shape: f32[16,8,32], index: 1, kind: input, shape index: {}]   ;;  %s1604_s2 = inlined_call_operand.hbm [shape: f32[16,1,32], index: 2, kind: input, shape index: {}]   ;;  %s1605_s3 = inlined_call_operand.hbm [shape: f32[16,1,32], index: 3, kind: input, shape index: {}]   ;;  %s1606_s4 = inlined_call_operand.hbm [shape: f32[16,8,32], index: 4, kind: output, shape index: {0}]   ;;  %s1607_s5 = inlined_call_operand.hbm [shape: f32[16,8,32], index: 5, kind: output, shape index: {1}]  }
   0x1   :  { %12 = vsyncpa [#allocation6], 0 }
   0x2   :  { %13 = vsyncpa [#allocation9], 0 }
   0x3   :  { %14 = vsyncpa [#allocation4], 0 }
   0x4   :  { %15 = vsyncpa [#allocation12], 0  ;;  %s1002_s18 = smov [#allocation5]   ;;  %s1003_s20 = smov [#allocation2]  }
   0x5   :  { %s33_s19 = sshll.u32 %s1002_s18, 4  ;;  %s21_s21 = sshll.u32 %s1003_s20, 4  ;;  %s34_s19 = int_to_ptr.vmem [resolvable:$true] %s33_s19  ;;  %s1043_s21 = int_to_ptr.vmem [resolvable:$true] %s21_s21 }
   0x6   :  { %s860_s24 = scalar_lea.hbm %s1603_s1, 2048 }
   0x7   :  { %p861_p0 = scmp.ne.s32.totalorder %s1603_s1, %s860_s24  ;;  %p864_p1 = scmp.lt.u32.totalorder %s860_s24, %s1603_s1 }
   0x9   :  { %p866_p2 = pnand %p864_p1, %p861_p0 }
   0xb   :  { %869 = shalt.err (!%p866_p2)
}
   0xc   :  { %s870_s29 = scalar_lea.vmem %s34_s19, 2048  ;;  %p875_p4 = scmp.lt.s32.totalorder %s34_s19, %s34_s19 }
   0xd   :  { %p871_p3 = scmp.ne.s32.totalorder %s34_s19, %s870_s29  ;;  %p876_p5 = scmp.lt.s32.totalorder %s870_s29, %s870_s29 }
   0xf   :  { %p877_p6 = por %p876_p5, %p875_p4 }
  0x11   :  { %p878_p7 = pnand %p877_p6, %p871_p3 }
  0x13   :  { %881 = shalt.err (!%p878_p7)
}
  0x14   :  { %s1004_s30 = smov 128   ;;  %s1005_s6 = smov 8  }
  0x15   :  { %39 = dma.hbm_to_vmem [thread:$0]  %s1603_s1, 2048, %s34_s19, [#allocation6], %s1004_s30, %s1004_s30, %s1005_s6  }
  0x16   :  { %s882_s11 = scalar_lea.hbm %s1602_s0, 2048 }
  0x17   :  { %p883_p8 = scmp.ne.s32.totalorder %s1602_s0, %s882_s11  ;;  %p886_p9 = scmp.lt.u32.totalorder %s882_s11, %s1602_s0 }
  0x19   :  { %p888_p10 = pnand %p886_p9, %p883_p8 }
  0x1b   :  { %891 = shalt.err (!%p888_p10)
}
  0x1c   :  { %s892_s16 = scalar_lea.vmem %s1043_s21, 2048  ;;  %p897_p12 = scmp.lt.s32.totalorder %s1043_s21, %s1043_s21 }
  0x1d   :  { %p893_p11 = scmp.ne.s32.totalorder %s1043_s21, %s892_s16  ;;  %p898_p13 = scmp.lt.s32.totalorder %s892_s16, %s892_s16 }
  0x1f   :  { %p899_p0 = por %p898_p13, %p897_p12 }
  0x21   :  { %p900_p1 = pnand %p899_p0, %p893_p11 }
  0x23   :  { %903 = shalt.err (!%p900_p1)
}
  0x24   :  { %27 = dma.hbm_to_vmem [thread:$0]  %s1602_s0, 2048, %s1043_s21, [#allocation3], %s1004_s30, %s1004_s30, %s1005_s6  }
  0x25   :  { %s1006_s18 = smov [#allocation7]   ;;  %s904_s23 = scalar_lea.hbm %s1604_s2, 256 }
  0x26   :  { %s45_s19 = sshll.u32 %s1006_s18, 4  ;;  %p905_p2 = scmp.ne.s32.totalorder %s1604_s2, %s904_s23  ;;  %s46_s19 = int_to_ptr.vmem [resolvable:$true] %s45_s19 }
  0x27   :  { %p908_p3 = scmp.lt.u32.totalorder %s904_s23, %s1604_s2 }
  0x29   :  { %p910_p4 = pnand %p908_p3, %p905_p2 }
  0x2b   :  { %913 = shalt.err (!%p910_p4)
}
  0x2c   :  { %s914_s28 = scalar_lea.vmem %s46_s19, 256  ;;  %p919_p6 = scmp.lt.s32.totalorder %s46_s19, %s46_s19 }
  0x2d   :  { %p915_p5 = scmp.ne.s32.totalorder %s46_s19, %s914_s28  ;;  %p920_p7 = scmp.lt.s32.totalorder %s914_s28, %s914_s28 }
  0x2f   :  { %p921_p8 = por %p920_p7, %p919_p6 }
  0x31   :  { %p922_p9 = pnand %p921_p8, %p915_p5 }
  0x33   :  { %925 = shalt.err (!%p922_p9)
}
  0x34   :  { %s1007_s0 = smov 16   ;;  %s1008_s21 = smov 1  }
  0x35   :  { %51 = dma.hbm_to_vmem [thread:$0]  %s1604_s2, 256, %s46_s19, [#allocation6], %s1007_s0, %s1007_s0, %s1008_s21  }
  0x36   :  { %s1009_s8 = smov [#allocation8]   ;;  %s926_s12 = scalar_lea.hbm %s1605_s3, 256 }
  0x37   :  { %s57_s9 = sshll.u32 %s1009_s8, 4  ;;  %p927_p10 = scmp.ne.s32.totalorder %s1605_s3, %s926_s12  ;;  %s58_s9 = int_to_ptr.vmem [resolvable:$true] %s57_s9 }
  0x38   :  { %p930_p11 = scmp.lt.u32.totalorder %s926_s12, %s1605_s3 }
  0x3a   :  { %p932_p12 = pnand %p930_p11, %p927_p10 }
  0x3c   :  { %935 = shalt.err (!%p932_p12)
}
  0x3d   :  { %s936_s1 = scalar_lea.vmem %s58_s9, 256  ;;  %p941_p0 = scmp.lt.s32.totalorder %s58_s9, %s58_s9 }
  0x3e   :  { %p937_p13 = scmp.ne.s32.totalorder %s58_s9, %s936_s1  ;;  %p942_p1 = scmp.lt.s32.totalorder %s936_s1, %s936_s1 }
  0x40   :  { %p943_p2 = por %p942_p1, %p941_p0 }
  0x42   :  { %p944_p3 = pnand %p943_p2, %p937_p13 }
  0x44   :  { %947 = shalt.err (!%p944_p3)
}
  0x45   :  { %63 = dma.hbm_to_vmem [thread:$0]  %s1605_s3, 256, %s58_s9, [#allocation9], %s1007_s0, %s1007_s0, %s1008_s21  }
  0x46   :  { %992 = dma.done.wait [#allocation3], 2048  }
  0x47   :  { %993 = vsyncadd [#allocation3], 4294965248 }
  0x48   :  { %994 = dma.done.wait [#allocation6], 2304  }
  0x49   :  { %995 = vsyncadd [#allocation6], 4294964992 }
  0x4a   :  { %996 = dma.done.wait [#allocation9], 256  }
  0x4b   :  { %997 = vsyncadd [#allocation9], 4294967040  ;;  %v1108_v0 = vld [vmem:[#allocation2 + $0x10] sm:$0xff]  ;;  %v1110_v1 = vld [vmem:[#allocation2] sm:$0xff]  ;;  %s1010_s18 = smov 112   ;;  %vm268_vm0 = vcmask 130048  }
  0x4c   :  { %v126_v2 = vsub.f32 0.0, %v1108_v0  ;;  %v124_v3 = vsub.f32 0.0, %v1110_v1  ;;  %v1114_v4 = vld [vmem:[#allocation2 + $0x18] sm:$0xff]  ;;  %v1116_v5 = vld [vmem:[#allocation2 + $0x8] sm:$0xff]  ;;  %v1124_v9 = vld [vmem:[#allocation2 + $0x20] sm:$0xff]  ;;  %vm525_vm1 = vcmask 261120  }
  0x4d   :  { %v127_v6 = vsub.f32 0.0, %v1114_v4  ;;  %v125_v7 = vsub.f32 0.0, %v1116_v5  ;;  %v1122_v8 = vld [vmem:[#allocation2 + $0x28] sm:$0xff]  ;;  %v128_v11 = vsub.f32 0.0, %v1124_v9  ;;  %v1130_v12 = vld [vmem:[#allocation2 + $0x38] sm:$0xff]  ;;  %v1132_v13 = vld [vmem:[#allocation2 + $0x30] sm:$0xff] }
  0x4e   :  { %160 = vrot.lane.b32.xlu1 %v126_v2, %s1010_s18  ;;  %156 = vrot.lane.b32.xlu0 %v124_v3, %s1010_s18  ;;  %v129_v10 = vsub.f32 0.0, %v1122_v8  ;;  %v131_v14 = vsub.f32 0.0, %v1130_v12  ;;  %v130_v15 = vsub.f32 0.0, %v1132_v13  ;;  %v1138_v16 = vld [vmem:[#allocation2 + $0x48] sm:$0xff]  ;;  %v1140_v17 = vld [vmem:[#allocation2 + $0x40] sm:$0xff]  ;;  %v1146_v20 = vld [vmem:[#allocation2 + $0x58] sm:$0xff] }
  0x4f   :  { %v133_v18 = vsub.f32 0.0, %v1138_v16  ;;  %v132_v19 = vsub.f32 0.0, %v1140_v17  ;;  %v1148_v21 = vld [vmem:[#allocation2 + $0x50] sm:$0xff]  ;;  %v135_v22 = vsub.f32 0.0, %v1146_v20  ;;  %v1154_v24 = vld [vmem:[#allocation2 + $0x68] sm:$0xff]  ;;  %v1156_v25 = vld [vmem:[#allocation2 + $0x60] sm:$0xff] }
  0x50   :  { %v134_v23 = vsub.f32 0.0, %v1148_v21  ;;  %v137_v26 = vsub.f32 0.0, %v1154_v24  ;;  %v136_v27 = vsub.f32 0.0, %v1156_v25  ;;  %v1162_v28 = vld [vmem:[#allocation2 + $0x78] sm:$0xff]  ;;  %v1164_v29 = vld [vmem:[#allocation2 + $0x70] sm:$0xff]  ;;  %v1200_v32 = vld [vmem:[#allocation5 + $0x8] sm:$0xff] }
  0x51   :  { %v139_v30 = vsub.f32 0.0, %v1162_v28  ;;  %v138_v31 = vsub.f32 0.0, %v1164_v29  ;;  %v1202_v33 = vld [vmem:[#allocation5] sm:$0xff]  ;;  %v559_v34 = vsub.f32 0.0, %v1200_v32  ;;  %v1210_v36 = vld [vmem:[#allocation5 + $0x18] sm:$0xff]  ;;  %v1212_v37 = vld [vmem:[#allocation5 + $0x10] sm:$0xff] }
  0x52   :  { %162 = vrot.lane.b32.xlu1 %v127_v6, %s1010_s18  ;;  %158 = vrot.lane.b32.xlu0 %v125_v7, %s1010_s18  ;;  %v558_v35 = vsub.f32 0.0, %v1202_v33  ;;  %v561_v38 = vsub.f32 0.0, %v1210_v36  ;;  %v560_v39 = vsub.f32 0.0, %v1212_v37  ;;  %v1218_v40 = vld [vmem:[#allocation5 + $0x28] sm:$0xff]  ;;  %v1220_v41 = vld [vmem:[#allocation5 + $0x20] sm:$0xff]  ;;  %v1226_v44 = vld [vmem:[#allocation5 + $0x38] sm:$0xff] }
  0x53   :  { %v563_v42 = vsub.f32 0.0, %v1218_v40  ;;  %v562_v43 = vsub.f32 0.0, %v1220_v41  ;;  %v1228_v45 = vld [vmem:[#allocation5 + $0x30] sm:$0xff]  ;;  %v565_v46 = vsub.f32 0.0, %v1226_v44  ;;  %v1234_v48 = vld [vmem:[#allocation5 + $0x48] sm:$0xff]  ;;  %v1236_v49 = vld [vmem:[#allocation5 + $0x40] sm:$0xff] }
  0x54   :  { %v564_v47 = vsub.f32 0.0, %v1228_v45  ;;  %v567_v50 = vsub.f32 0.0, %v1234_v48  ;;  %v566_v51 = vsub.f32 0.0, %v1236_v49  ;;  %v1242_v52 = vld [vmem:[#allocation5 + $0x58] sm:$0xff]  ;;  %v1244_v53 = vld [vmem:[#allocation5 + $0x50] sm:$0xff]  ;;  %v1250_v56 = vld [vmem:[#allocation5 + $0x68] sm:$0xff] }
  0x55   :  { %v569_v54 = vsub.f32 0.0, %v1242_v52  ;;  %v568_v55 = vsub.f32 0.0, %v1244_v53  ;;  %v1252_v57 = vld [vmem:[#allocation5 + $0x60] sm:$0xff]  ;;  %v571_v58 = vsub.f32 0.0, %v1250_v56  ;;  %v1258_v60 = vld [vmem:[#allocation5 + $0x78] sm:$0xff]  ;;  %v1260_v61 = vld [vmem:[#allocation5 + $0x70] sm:$0xff] }
  0x56   :  { %166 = vrot.lane.b32.xlu1 %v129_v10, %s1010_s18  ;;  %164 = vrot.lane.b32.xlu0 %v128_v11, %s1010_s18  ;;  %v570_v59 = vsub.f32 0.0, %v1252_v57  ;;  %1617 = vst [vmem:[#allocation18_spill] sm:$0xff] %v1258_v60  ;;  %1618 = vst [vmem:[#allocation19_spill] sm:$0xff] %v1260_v61  ;;  %v573_v62 = vsub.f32 0.0, %v1258_v60  ;;  %v572_v63 = vsub.f32 0.0, %v1260_v61  ;;  %s1011_s3 = smov [#allocation10]  }
  0x57   :  { %s787_s19 = sshll.u32 %s1011_s3, 4  ;;  %s788_s19 = int_to_ptr.vmem [resolvable:$true] %s787_s19 }
  0x58   :  { %s948_s20 = scalar_lea.vmem %s788_s19, 2048  ;;  %p953_p5 = scmp.lt.s32.totalorder %s788_s19, %s788_s19 }
  0x59   :  { %p949_p4 = scmp.ne.s32.totalorder %s788_s19, %s948_s20  ;;  %p954_p6 = scmp.lt.s32.totalorder %s948_s20, %s948_s20 }
  0x5a   :  { %170 = vrot.lane.b32.xlu1 %v131_v14, %s1010_s18  ;;  %168 = vrot.lane.b32.xlu0 %v130_v15, %s1010_s18 }
  0x5b   :  { %p955_p7 = por %p954_p6, %p953_p5 }
  0x5d   :  { %p956_p8 = pnand %p955_p7, %p949_p4 }
  0x5e   :  { %174 = vrot.lane.b32.xlu1 %v133_v18, %s1010_s18  ;;  %172 = vrot.lane.b32.xlu0 %v132_v19, %s1010_s18 }
  0x62   :  { %178 = vrot.lane.b32.xlu1 %v135_v22, %s1010_s18  ;;  %176 = vrot.lane.b32.xlu0 %v134_v23, %s1010_s18 }
  0x66   :  { %182 = vrot.lane.b32.xlu1 %v137_v26, %s1010_s18  ;;  %180 = vrot.lane.b32.xlu0 %v136_v27, %s1010_s18 }
  0x6a   :  { %186 = vrot.lane.b32.xlu1 %v139_v30, %s1010_s18  ;;  %184 = vrot.lane.b32.xlu0 %v138_v31, %s1010_s18 }
  0x6e   :  { %222 = vrot.lane.b32.xlu1 %v1116_v5, %s1007_s0  ;;  %220 = vrot.lane.b32.xlu0 %v1110_v1, %s1007_s0 }
  0x72   :  { %226 = vrot.lane.b32.xlu1 %v1114_v4, %s1007_s0  ;;  %224 = vrot.lane.b32.xlu0 %v1108_v0, %s1007_s0 }
  0x76   :  { %230 = vrot.lane.b32.xlu1 %v1122_v8, %s1007_s0  ;;  %228 = vrot.lane.b32.xlu0 %v1124_v9, %s1007_s0 }
  0x7a   :  { %234 = vrot.lane.b32.xlu1 %v1130_v12, %s1007_s0  ;;  %232 = vrot.lane.b32.xlu0 %v1132_v13, %s1007_s0 }
  0x7e   :  { %238 = vrot.lane.b32.xlu1 %v1138_v16, %s1007_s0  ;;  %236 = vrot.lane.b32.xlu0 %v1140_v17, %s1007_s0 }
  0x82   :  { %242 = vrot.lane.b32.xlu1 %v1146_v20, %s1007_s0  ;;  %240 = vrot.lane.b32.xlu0 %v1148_v21, %s1007_s0 }
  0x86   :  { %246 = vrot.lane.b32.xlu1 %v1154_v24, %s1007_s0  ;;  %244 = vrot.lane.b32.xlu0 %v1156_v25, %s1007_s0 }
  0x8a   :  { %250 = vrot.lane.b32.xlu1 %v1162_v28, %s1007_s0  ;;  %248 = vrot.lane.b32.xlu0 %v1164_v29, %s1007_s0 }
  0x8e   :  { %592 = vrot.lane.b32.xlu1 %v559_v34, %s1010_s18  ;;  %590 = vrot.lane.b32.xlu0 %v558_v35, %s1010_s18  ;;  %v1320_v34 = vld [vmem:[#allocation7] ss:$0 sm:$0xff]  ;;  %v1322_v35 = vld [vmem:[#allocation7 + $0x1] ss:$0 sm:$0xff] }
  0x92   :  { %596 = vrot.lane.b32.xlu1 %v561_v38, %s1010_s18  ;;  %594 = vrot.lane.b32.xlu0 %v560_v39, %s1010_s18  ;;  %v1324_v38 = vld [vmem:[#allocation8 + $0x1] ss:$0 sm:$0xff]  ;;  %v1326_v39 = vld [vmem:[#allocation8] ss:$0 sm:$0xff] }
  0x96   :  { %600 = vrot.lane.b32.xlu1 %v563_v42, %s1010_s18  ;;  %598 = vrot.lane.b32.xlu0 %v562_v43, %s1010_s18  ;;  %v381_v42 = vmul.f32 %v1320_v34, %v1110_v1  ;;  %v1342_v1 = vld [vmem:[#allocation8 + $0x2] ss:$0 sm:$0xff] }
  0x9a   :  { %604 = vrot.lane.b32.xlu1 %v565_v46, %s1010_s18  ;;  %602 = vrot.lane.b32.xlu0 %v564_v47, %s1010_s18  ;;  %v382_v46 = vmul.f32 %v1322_v35, %v1116_v5 }
  0x9e   :  { %608 = vrot.lane.b32.xlu1 %v567_v50, %s1010_s18  ;;  %606 = vrot.lane.b32.xlu0 %v566_v51, %s1010_s18  ;;  %v1332_v50 = vld [vmem:[#allocation7 + $0x2] ss:$0 sm:$0xff] }
  0x9f   :  { %v383_v5 = vmul.f32 %v1332_v50, %v1108_v0 }
  0xa2   :  { %612 = vrot.lane.b32.xlu1 %v569_v54, %s1010_s18  ;;  %610 = vrot.lane.b32.xlu0 %v568_v55, %s1010_s18  ;;  %v1336_v55 = vld [vmem:[#allocation7 + $0x3] ss:$0 sm:$0xff] }
  0xa6   :  { %616 = vrot.lane.b32.xlu1 %v571_v58, %s1010_s18  ;;  %614 = vrot.lane.b32.xlu0 %v570_v59, %s1010_s18 }
  0xaa   :  { %620 = vrot.lane.b32.xlu1 %v573_v62, %s1010_s18  ;;  %618 = vrot.lane.b32.xlu0 %v572_v63, %s1010_s18  ;;  %v1340_v62 = vld [vmem:[#allocation8 + $0x3] ss:$0 sm:$0xff] }
  0xae   :  { %656 = vrot.lane.b32.xlu1 %v1200_v32, %s1007_s0  ;;  %654 = vrot.lane.b32.xlu0 %v1202_v33, %s1007_s0 }
  0xb2   :  { %660 = vrot.lane.b32.xlu1 %v1210_v36, %s1007_s0  ;;  %658 = vrot.lane.b32.xlu0 %v1212_v37, %s1007_s0 }
  0xb6   :  { %664 = vrot.lane.b32.xlu1 %v1218_v40, %s1007_s0  ;;  %662 = vrot.lane.b32.xlu0 %v1220_v41, %s1007_s0 }
  0xba   :  { %668 = vrot.lane.b32.xlu1 %v1226_v44, %s1007_s0  ;;  %666 = vrot.lane.b32.xlu0 %v1228_v45, %s1007_s0 }
  0xbe   :  { %672 = vrot.lane.b32.xlu1 %v1234_v48, %s1007_s0  ;;  %670 = vrot.lane.b32.xlu0 %v1236_v49, %s1007_s0 }
  0xc0   :  { %v161_v2 = vpop.permute.xlu1 %160  ;;  %v157_v3 = vpop.permute.xlu0 %156 }
  0xc2   :  { %676 = vrot.lane.b32.xlu1 %v1242_v52, %s1007_s0  ;;  %674 = vrot.lane.b32.xlu0 %v1244_v53, %s1007_s0 }
  0xc4   :  { %v163_v6 = vpop.permute.xlu1 %162  ;;  %v159_v7 = vpop.permute.xlu0 %158 }
  0xc6   :  { %680 = vrot.lane.b32.xlu1 %v1250_v56, %s1007_s0  ;;  %678 = vrot.lane.b32.xlu0 %v1252_v57, %s1007_s0 }
  0xc8   :  { %v167_v10 = vpop.permute.xlu1 %166  ;;  %v165_v11 = vpop.permute.xlu0 %164 }
  0xca   :  { %684 = vrot.lane.b32.xlu1 %v1258_v60, %s1007_s0  ;;  %682 = vrot.lane.b32.xlu0 %v1260_v61, %s1007_s0 }
  0xcc   :  { %v1300_v14 = vpop.permute.xlu1 %170  ;;  %v1302_v15 = vpop.permute.xlu0 %168 }
  0xd0   :  { %v1304_v18 = vpop.permute.xlu1 %174  ;;  %v1306_v19 = vpop.permute.xlu0 %172 }
  0xd4   :  { %v1308_v22 = vpop.permute.xlu1 %178  ;;  %v1310_v23 = vpop.permute.xlu0 %176 }
  0xd8   :  { %v1312_v26 = vpop.permute.xlu1 %182  ;;  %v1314_v27 = vpop.permute.xlu0 %180 }
  0xdc   :  { %v1316_v30 = vpop.permute.xlu1 %186  ;;  %v1318_v31 = vpop.permute.xlu0 %184 }
  0xe0   :  { %v223_v43 = vpop.permute.xlu1 %222  ;;  %v221_v47 = vpop.permute.xlu0 %220 }
  0xe1   :  { %v270_v51 = vsel %vm268_vm0, %v159_v7, %v223_v43  ;;  %v269_v54 = vsel %vm268_vm0, %v157_v3, %v221_v47  ;;  %v384_v3 = vmul.f32 %v1336_v55, %v1114_v4  ;;  %v1360_v4 = vld [vmem:[#allocation8 + $0x4] ss:$0 sm:$0xff] }
  0xe2   :  { %v494_v58 = vmul.f32 %v1324_v38, %v270_v51  ;;  %v493_v59 = vmul.f32 %v1326_v39, %v269_v54  ;;  %v1350_v51 = vld [vmem:[#allocation7 + $0x5] ss:$0 sm:$0xff]  ;;  %v1352_v54 = vld [vmem:[#allocation7 + $0x4] ss:$0 sm:$0xff] }
  0xe4   :  { %v510_v63 = vadd.f32 %v494_v58, %v382_v46  ;;  %v509_v61 = vadd.f32 %v493_v59, %v381_v42  ;;  %v227_v60 = vpop.permute.xlu1 %226  ;;  %v225_v7 = vpop.permute.xlu0 %224  ;;  %v1358_v46 = vld [vmem:[#allocation8 + $0x5] ss:$0 sm:$0xff] }
  0xe5   :  { %v272_v43 = vsel %vm268_vm0, %v163_v6, %v227_v60  ;;  %v271_v47 = vsel %vm268_vm0, %v161_v2, %v225_v7  ;;  %v386_v2 = vmul.f32 %v1350_v51, %v1122_v8 }
  0xe6   :  { %527 = vst.msk [vmem:[#allocation10 + $0x8] sm:$0xff] %vm525_vm1, %v510_v63  ;;  %526 = vst.msk [vmem:[#allocation10] sm:$0xff] %vm525_vm1, %v509_v61  ;;  %v496_v0 = vmul.f32 %v1340_v62, %v272_v43  ;;  %v495_v42 = vmul.f32 %v1342_v1, %v271_v47  ;;  %v385_v63 = vmul.f32 %v1352_v54, %v1124_v9  ;;  %v1368_v43 = vld [vmem:[#allocation7 + $0x7] ss:$0 sm:$0xff]  ;;  %v1370_v47 = vld [vmem:[#allocation7 + $0x6] ss:$0 sm:$0xff] }
  0xe8   :  { %v512_v58 = vadd.f32 %v496_v0, %v384_v3  ;;  %v511_v60 = vadd.f32 %v495_v42, %v383_v5  ;;  %v231_v6 = vpop.permute.xlu1 %230  ;;  %v229_v59 = vpop.permute.xlu0 %228  ;;  %v1376_v3 = vld [vmem:[#allocation8 + $0x7] ss:$0 sm:$0xff]  ;;  %v1378_v0 = vld [vmem:[#allocation8 + $0x6] ss:$0 sm:$0xff] }
  0xe9   :  { %v274_v61 = vsel %vm268_vm0, %v167_v10, %v231_v6  ;;  %v273_v7 = vsel %vm268_vm0, %v165_v11, %v229_v59  ;;  %v388_v11 = vmul.f32 %v1368_v43, %v1130_v12 }
  0xea   :  { %529 = vst.msk [vmem:[#allocation10 + $0x18] sm:$0xff] %vm525_vm1, %v512_v58  ;;  %528 = vst.msk [vmem:[#allocation10 + $0x10] sm:$0xff] %vm525_vm1, %v511_v60  ;;  %v498_v5 = vmul.f32 %v1358_v46, %v274_v61  ;;  %v497_v8 = vmul.f32 %v1360_v4, %v273_v7  ;;  %v387_v58 = vmul.f32 %v1370_v47, %v1132_v13  ;;  %v1388_v61 = vld [vmem:[#allocation7 + $0x9] ss:$0 sm:$0xff]  ;;  %v1390_v7 = vld [vmem:[#allocation7 + $0x8] ss:$0 sm:$0xff] }
  0xeb   :  { %v1398_v13 = vld [vmem:[#allocation8 + $0x8] ss:$0 sm:$0xff] }
  0xec   :  { %v514_v9 = vadd.f32 %v498_v5, %v386_v2  ;;  %v513_v10 = vadd.f32 %v497_v8, %v385_v63  ;;  %v235_v42 = vpop.permute.xlu1 %234  ;;  %v233_v6 = vpop.permute.xlu0 %232  ;;  %v1396_v63 = vld [vmem:[#allocation8 + $0x9] ss:$0 sm:$0xff] }
  0xed   :  { %v276_v60 = vsel %vm268_vm0, %v1300_v14, %v235_v42  ;;  %v275_v59 = vsel %vm268_vm0, %v1302_v15, %v233_v6  ;;  %v390_v15 = vmul.f32 %v1388_v61, %v1138_v16 }
  0xee   :  { %531 = vst.msk [vmem:[#allocation10 + $0x28] sm:$0xff] %vm525_vm1, %v514_v9  ;;  %530 = vst.msk [vmem:[#allocation10 + $0x20] sm:$0xff] %vm525_vm1, %v513_v10  ;;  %v500_v12 = vmul.f32 %v1376_v3, %v276_v60  ;;  %v499_v2 = vmul.f32 %v1378_v0, %v275_v59  ;;  %v389_v9 = vmul.f32 %v1390_v7, %v1140_v17  ;;  %v1408_v60 = vld [vmem:[#allocation7 + $0xb] ss:$0 sm:$0xff]  ;;  %v1410_v59 = vld [vmem:[#allocation7 + $0xa] ss:$0 sm:$0xff] }
  0xef   :  { %v1418_v17 = vld [vmem:[#allocation8 + $0xa] ss:$0 sm:$0xff] }
  0xf0   :  { %v516_v14 = vadd.f32 %v500_v12, %v388_v11  ;;  %v515_v5 = vadd.f32 %v499_v2, %v387_v58  ;;  %v239_v8 = vpop.permute.xlu1 %238  ;;  %v237_v42 = vpop.permute.xlu0 %236  ;;  %v1416_v58 = vld [vmem:[#allocation8 + $0xb] ss:$0 sm:$0xff] }
  0xf1   :  { %v278_v10 = vsel %vm268_vm0, %v1304_v18, %v239_v8  ;;  %v277_v6 = vsel %vm268_vm0, %v1306_v19, %v237_v42  ;;  %v392_v19 = vmul.f32 %v1408_v60, %v1146_v20 }
  0xf2   :  { %533 = vst.msk [vmem:[#allocation10 + $0x38] sm:$0xff] %vm525_vm1, %v516_v14  ;;  %532 = vst.msk [vmem:[#allocation10 + $0x30] sm:$0xff] %vm525_vm1, %v515_v5  ;;  %v502_v16 = vmul.f32 %v1396_v63, %v278_v10  ;;  %v501_v11 = vmul.f32 %v1398_v13, %v277_v6  ;;  %v391_v14 = vmul.f32 %v1410_v59, %v1148_v21  ;;  %v1428_v10 = vld [vmem:[#allocation7 + $0xd] ss:$0 sm:$0xff]  ;;  %v1430_v6 = vld [vmem:[#allocation7 + $0xc] ss:$0 sm:$0xff] }
  0xf3   :  { %1619 = vst [vmem:[#allocation20_spill] sm:$0xff] %v1430_v6  ;;  %v1438_v21 = vld [vmem:[#allocation8 + $0xc] ss:$0 sm:$0xff] }
  0xf4   :  { %v518_v18 = vadd.f32 %v502_v16, %v390_v15  ;;  %v517_v12 = vadd.f32 %v501_v11, %v389_v9  ;;  %v243_v2 = vpop.permute.xlu1 %242  ;;  %v241_v8 = vpop.permute.xlu0 %240  ;;  %v1436_v9 = vld [vmem:[#allocation8 + $0xd] ss:$0 sm:$0xff]  ;;  %1621 = vst [vmem:[#allocation22_spill] sm:$0xff] %v1438_v21 }
  0xf5   :  { %v280_v5 = vsel %vm268_vm0, %v1308_v22, %v243_v2  ;;  %v279_v42 = vsel %vm268_vm0, %v1310_v23, %v241_v8  ;;  %1620 = vst [vmem:[#allocation21_spill] sm:$0xff] %v1436_v9  ;;  %v394_v23 = vmul.f32 %v1428_v10, %v1154_v24 }
  0xf6   :  { %535 = vst.msk [vmem:[#allocation10 + $0x48] sm:$0xff] %vm525_vm1, %v518_v18  ;;  %534 = vst.msk [vmem:[#allocation10 + $0x40] sm:$0xff] %vm525_vm1, %v517_v12  ;;  %v504_v20 = vmul.f32 %v1416_v58, %v280_v5  ;;  %v503_v15 = vmul.f32 %v1418_v17, %v279_v42  ;;  %v393_v18 = vmul.f32 %v1430_v6, %v1156_v25  ;;  %v1448_v5 = vld [vmem:[#allocation7 + $0xf] ss:$0 sm:$0xff]  ;;  %v1450_v42 = vld [vmem:[#allocation7 + $0xe] ss:$0 sm:$0xff] }
  0xf7   :  { %1622 = vst [vmem:[#allocation23_spill] sm:$0xff] %v1448_v5  ;;  %1623 = vst [vmem:[#allocation24_spill] sm:$0xff] %v1450_v42  ;;  %v1458_v25 = vld [vmem:[#allocation8 + $0xe] ss:$0 sm:$0xff] }
  0xf8   :  { %v520_v22 = vadd.f32 %v504_v20, %v392_v19  ;;  %v519_v16 = vadd.f32 %v503_v15, %v391_v14  ;;  %v247_v11 = vpop.permute.xlu1 %246  ;;  %v245_v2 = vpop.permute.xlu0 %244  ;;  %v1456_v14 = vld [vmem:[#allocation8 + $0xf] ss:$0 sm:$0xff]  ;;  %1625 = vst [vmem:[#allocation26_spill] sm:$0xff] %v1458_v25 }
  0xf9   :  { %v282_v12 = vsel %vm268_vm0, %v1312_v26, %v247_v11  ;;  %v281_v8 = vsel %vm268_vm0, %v1314_v27, %v245_v2  ;;  %1624 = vst [vmem:[#allocation25_spill] sm:$0xff] %v1456_v14  ;;  %v396_v27 = vmul.f32 %v1448_v5, %v1162_v28 }
  0xfa   :  { %537 = vst.msk [vmem:[#allocation10 + $0x58] sm:$0xff] %vm525_vm1, %v520_v22  ;;  %536 = vst.msk [vmem:[#allocation10 + $0x50] sm:$0xff] %vm525_vm1, %v519_v16  ;;  %v506_v24 = vmul.f32 %v1436_v9, %v282_v12  ;;  %v505_v19 = vmul.f32 %v1438_v21, %v281_v8  ;;  %v395_v22 = vmul.f32 %v1450_v42, %v1164_v29 }
  0xfc   :  { %v522_v26 = vadd.f32 %v506_v24, %v394_v23  ;;  %v521_v20 = vadd.f32 %v505_v19, %v393_v18  ;;  %v251_v15 = vpop.permute.xlu1 %250  ;;  %v249_v11 = vpop.permute.xlu0 %248 }
  0xfd   :  { %v284_v16 = vsel %vm268_vm0, %v1316_v30, %v251_v15  ;;  %v283_v2 = vsel %vm268_vm0, %v1318_v31, %v249_v11 }
  0xfe   :  { %539 = vst.msk [vmem:[#allocation10 + $0x68] sm:$0xff] %vm525_vm1, %v522_v26  ;;  %538 = vst.msk [vmem:[#allocation10 + $0x60] sm:$0xff] %vm525_vm1, %v521_v20  ;;  %v508_v23 = vmul.f32 %v1456_v14, %v284_v16  ;;  %v507_v28 = vmul.f32 %v1458_v25, %v283_v2 }
 0x100   :  { %v524_v18 = vadd.f32 %v508_v23, %v396_v27  ;;  %v523_v12 = vadd.f32 %v507_v28, %v395_v22  ;;  %v593_v8 = vpop.permute.xlu1 %592  ;;  %v591_v29 = vpop.permute.xlu0 %590 }
 0x102   :  { %541 = vst.msk [vmem:[#allocation10 + $0x78] sm:$0xff] %vm525_vm1, %v524_v18  ;;  %540 = vst.msk [vmem:[#allocation10 + $0x70] sm:$0xff] %vm525_vm1, %v523_v12 }
 0x103   :  { %959 = shalt.err (!%p956_p8)
}
 0x104   :  { %s960_s24 = scalar_lea.hbm %s1606_s4, 2048 }
 0x105   :  { %p961_p9 = scmp.ne.s32.totalorder %s1606_s4, %s960_s24  ;;  %p964_p10 = scmp.lt.u32.totalorder %s960_s24, %s1606_s4 }
 0x107   :  { %p966_p11 = pnand %p964_p10, %p961_p9 }
 0x109   :  { %969 = shalt.err (!%p966_p11)
}
 0x10a   :  { %793 = dma.vmem_to_hbm [thread:$0]  %s788_s19, 2048, %s1606_s4, [#allocation4], %s1004_s30, %s1004_s30, %s1005_s6   ;;  %v597_v30 = vpop.permute.xlu1 %596  ;;  %v595_v31 = vpop.permute.xlu0 %594  ;;  %v719_v12 = vmul.f32 %v1322_v35, %v1200_v32  ;;  %v718_v14 = vmul.f32 %v1320_v34, %v1202_v33  ;;  %v720_v32 = vmul.f32 %v1332_v50, %v1212_v37  ;;  %v722_v37 = vmul.f32 %v1352_v54, %v1220_v41 }
 0x10b   :  { %v724_v41 = vmul.f32 %v1370_v47, %v1228_v45  ;;  %v726_v45 = vmul.f32 %v1390_v7, %v1236_v49  ;;  %v728_v49 = vmul.f32 %v1410_v59, %v1244_v53  ;;  %v731_v53 = vmul.f32 %v1428_v10, %v1250_v56  ;;  %s1012_s4 = smov [#allocation11]  }
 0x10c   :  { %s799_s29 = sshll.u32 %s1012_s4, 4  ;;  %s800_s29 = int_to_ptr.vmem [resolvable:$true] %s799_s29 }
 0x10d   :  { %s970_s7 = scalar_lea.vmem %s800_s29, 2048  ;;  %p975_p13 = scmp.lt.s32.totalorder %s800_s29, %s800_s29 }
 0x10e   :  { %v601_v24 = vpop.permute.xlu1 %600  ;;  %v599_v19 = vpop.permute.xlu0 %598  ;;  %p971_p12 = scmp.ne.s32.totalorder %s800_s29, %s970_s7  ;;  %p976_p0 = scmp.lt.s32.totalorder %s970_s7, %s970_s7 }
 0x110   :  { %p977_p1 = por %p976_p0, %p975_p13 }
 0x112   :  { %v605_v26 = vpop.permute.xlu1 %604  ;;  %v603_v20 = vpop.permute.xlu0 %602  ;;  %p978_p2 = pnand %p977_p1, %p971_p12 }
 0x116   :  { %v609_v15 = vpop.permute.xlu1 %608  ;;  %v607_v27 = vpop.permute.xlu0 %606 }
 0x11a   :  { %v1489_v11 = vpop.permute.xlu1 %612  ;;  %v1491_v22 = vpop.permute.xlu0 %610 }
 0x11e   :  { %v1493_v16 = vpop.permute.xlu1 %616  ;;  %v1495_v2 = vpop.permute.xlu0 %614 }
 0x11f   :  { %1626 = vst [vmem:[#allocation27_spill] sm:$0xff] %v1493_v16  ;;  %1627 = vst [vmem:[#allocation28_spill] sm:$0xff] %v1495_v2 }
 0x122   :  { %v1497_v23 = vpop.permute.xlu1 %620  ;;  %v1499_v28 = vpop.permute.xlu0 %618 }
 0x123   :  { %1628 = vst [vmem:[#allocation29_spill] sm:$0xff] %v1497_v23  ;;  %1629 = vst [vmem:[#allocation30_spill] sm:$0xff] %v1499_v28  ;;  %v721_v28 = vmul.f32 %v1336_v55, %v1210_v36  ;;  %v723_v36 = vmul.f32 %v1350_v51, %v1218_v40  ;;  %v725_v40 = vmul.f32 %v1368_v43, %v1226_v44 }
 0x124   :  { %v727_v44 = vmul.f32 %v1388_v61, %v1234_v48  ;;  %v729_v48 = vmul.f32 %v1408_v60, %v1242_v52 }
 0x126   :  { %v657_v18 = vpop.permute.xlu1 %656  ;;  %v655_v25 = vpop.permute.xlu0 %654 }
 0x127   :  { %v703_v42 = vsel %vm268_vm0, %v593_v8, %v657_v18  ;;  %v702_v5 = vsel %vm268_vm0, %v591_v29, %v655_v25 }
 0x128   :  { %v735_v21 = vmul.f32 %v1324_v38, %v703_v42  ;;  %v734_v9 = vmul.f32 %v1326_v39, %v702_v5 }
 0x12a   :  { %v751_v2 = vadd.f32 %v735_v21, %v719_v12  ;;  %v750_v23 = vadd.f32 %v734_v9, %v718_v14  ;;  %v661_v16 = vpop.permute.xlu1 %660  ;;  %v659_v6 = vpop.permute.xlu0 %658 }
 0x12b   :  { %v705_v33 = vsel %vm268_vm0, %v597_v30, %v661_v16  ;;  %v704_v34 = vsel %vm268_vm0, %v595_v31, %v659_v6  ;;  %v1631_v16 = vld [vmem:[#allocation27_spill] sm:$0xff] }
 0x12c   :  { %767 = vst.msk [vmem:[#allocation11 + $0x8] sm:$0xff] %vm525_vm1, %v751_v2  ;;  %766 = vst.msk [vmem:[#allocation11] sm:$0xff] %vm525_vm1, %v750_v23  ;;  %v737_v35 = vmul.f32 %v1340_v62, %v705_v33  ;;  %v736_v38 = vmul.f32 %v1342_v1, %v704_v34  ;;  %v1632_v2 = vld [vmem:[#allocation28_spill] sm:$0xff]  ;;  %v1636_v33 = vld [vmem:[#allocation23_spill] sm:$0xff] }
 0x12e   :  { %v753_v39 = vadd.f32 %v737_v35, %v721_v28  ;;  %v752_v9 = vadd.f32 %v736_v38, %v720_v32  ;;  %v665_v21 = vpop.permute.xlu1 %664  ;;  %v663_v55 = vpop.permute.xlu0 %662  ;;  %v1634_v28 = vld [vmem:[#allocation22_spill] sm:$0xff]  ;;  %v1637_v35 = vld [vmem:[#allocation19_spill] sm:$0xff]  ;;  %v1638_v38 = vld [vmem:[#allocation24_spill] sm:$0xff] }
 0x12f   :  { %v707_v50 = vsel %vm268_vm0, %v601_v24, %v665_v21  ;;  %v706_v6 = vsel %vm268_vm0, %v599_v19, %v663_v55  ;;  %v1635_v32 = vld [vmem:[#allocation18_spill] sm:$0xff] }
 0x130   :  { %769 = vst.msk [vmem:[#allocation11 + $0x18] sm:$0xff] %vm525_vm1, %v753_v39  ;;  %768 = vst.msk [vmem:[#allocation11 + $0x10] sm:$0xff] %vm525_vm1, %v752_v9  ;;  %v739_v62 = vmul.f32 %v1358_v46, %v707_v50  ;;  %v738_v1 = vmul.f32 %v1360_v4, %v706_v6  ;;  %v732_v39 = vmul.f32 %v1638_v38, %v1637_v35  ;;  %v1639_v9 = vld [vmem:[#allocation29_spill] sm:$0xff]  ;;  %v1642_v6 = vld [vmem:[#allocation26_spill] sm:$0xff] }
 0x132   :  { %v755_v5 = vadd.f32 %v739_v62, %v723_v36  ;;  %v754_v42 = vadd.f32 %v738_v1, %v722_v37  ;;  %v669_v14 = vpop.permute.xlu1 %668  ;;  %v667_v51 = vpop.permute.xlu0 %666  ;;  %v1640_v36 = vld [vmem:[#allocation30_spill] sm:$0xff]  ;;  %v1641_v37 = vld [vmem:[#allocation25_spill] sm:$0xff] }
 0x133   :  { %v709_v54 = vsel %vm268_vm0, %v605_v26, %v669_v14  ;;  %v708_v25 = vsel %vm268_vm0, %v603_v20, %v667_v51 }
 0x134   :  { %771 = vst.msk [vmem:[#allocation11 + $0x28] sm:$0xff] %vm525_vm1, %v755_v5  ;;  %770 = vst.msk [vmem:[#allocation11 + $0x20] sm:$0xff] %vm525_vm1, %v754_v42  ;;  %v741_v46 = vmul.f32 %v1376_v3, %v709_v54  ;;  %v740_v4 = vmul.f32 %v1378_v0, %v708_v25 }
 0x136   :  { %v757_v8 = vadd.f32 %v741_v46, %v725_v40  ;;  %v756_v29 = vadd.f32 %v740_v4, %v724_v41  ;;  %v673_v30 = vpop.permute.xlu1 %672  ;;  %v671_v43 = vpop.permute.xlu0 %670 }
 0x137   :  { %v711_v47 = vsel %vm268_vm0, %v609_v15, %v673_v30  ;;  %v710_v31 = vsel %vm268_vm0, %v607_v27, %v671_v43  ;;  %v1630_v27 = vld [vmem:[#allocation20_spill] sm:$0xff] }
 0x138   :  { %773 = vst.msk [vmem:[#allocation11 + $0x38] sm:$0xff] %vm525_vm1, %v757_v8  ;;  %772 = vst.msk [vmem:[#allocation11 + $0x30] sm:$0xff] %vm525_vm1, %v756_v29  ;;  %v743_v3 = vmul.f32 %v1396_v63, %v711_v47  ;;  %v742_v0 = vmul.f32 %v1398_v13, %v710_v31 }
 0x13a   :  { %v759_v24 = vadd.f32 %v743_v3, %v727_v44  ;;  %v758_v19 = vadd.f32 %v742_v0, %v726_v45  ;;  %v677_v26 = vpop.permute.xlu1 %676  ;;  %v675_v61 = vpop.permute.xlu0 %674 }
 0x13b   :  { %v713_v7 = vsel %vm268_vm0, %v1489_v11, %v677_v26  ;;  %v712_v20 = vsel %vm268_vm0, %v1491_v22, %v675_v61  ;;  %v730_v11 = vmul.f32 %v1630_v27, %v1252_v57  ;;  %v733_v57 = vmul.f32 %v1636_v33, %v1635_v32 }
 0x13c   :  { %775 = vst.msk [vmem:[#allocation11 + $0x48] sm:$0xff] %vm525_vm1, %v759_v24  ;;  %774 = vst.msk [vmem:[#allocation11 + $0x40] sm:$0xff] %vm525_vm1, %v758_v19  ;;  %v745_v63 = vmul.f32 %v1416_v58, %v713_v7  ;;  %v744_v13 = vmul.f32 %v1418_v17, %v712_v20  ;;  %v1633_v58 = vld [vmem:[#allocation21_spill] sm:$0xff] }
 0x13e   :  { %v761_v15 = vadd.f32 %v745_v63, %v729_v48  ;;  %v760_v52 = vadd.f32 %v744_v13, %v728_v49  ;;  %v681_v60 = vpop.permute.xlu1 %680  ;;  %v679_v59 = vpop.permute.xlu0 %678 }
 0x13f   :  { %v715_v22 = vsel %vm268_vm0, %v1631_v16, %v681_v60  ;;  %v714_v23 = vsel %vm268_vm0, %v1632_v2, %v679_v59 }
 0x140   :  { %777 = vst.msk [vmem:[#allocation11 + $0x58] sm:$0xff] %vm525_vm1, %v761_v15  ;;  %776 = vst.msk [vmem:[#allocation11 + $0x50] sm:$0xff] %vm525_vm1, %v760_v52  ;;  %v747_v17 = vmul.f32 %v1633_v58, %v715_v22  ;;  %v746_v18 = vmul.f32 %v1634_v28, %v714_v23 }
 0x142   :  { %v763_v12 = vadd.f32 %v747_v17, %v731_v53  ;;  %v762_v56 = vadd.f32 %v746_v18, %v730_v11  ;;  %v685_v10 = vpop.permute.xlu1 %684  ;;  %v683_v34 = vpop.permute.xlu0 %682 }
 0x143   :  { %v717_v21 = vsel %vm268_vm0, %v1639_v9, %v685_v10  ;;  %v716_v55 = vsel %vm268_vm0, %v1640_v36, %v683_v34 }
 0x144   :  { %779 = vst.msk [vmem:[#allocation11 + $0x68] sm:$0xff] %vm525_vm1, %v763_v12  ;;  %778 = vst.msk [vmem:[#allocation11 + $0x60] sm:$0xff] %vm525_vm1, %v762_v56  ;;  %v749_v50 = vmul.f32 %v1641_v37, %v717_v21  ;;  %v748_v62 = vmul.f32 %v1642_v6, %v716_v55 }
 0x146   :  { %v765_v1 = vadd.f32 %v749_v50, %v733_v57  ;;  %v764_v5 = vadd.f32 %v748_v62, %v732_v39 }
 0x148   :  { %781 = vst.msk [vmem:[#allocation11 + $0x78] sm:$0xff] %vm525_vm1, %v765_v1  ;;  %780 = vst.msk [vmem:[#allocation11 + $0x70] sm:$0xff] %vm525_vm1, %v764_v5 }
 0x149   :  { %981 = shalt.err (!%p978_p2)
}
 0x14a   :  { %s982_s10 = scalar_lea.hbm %s1607_s5, 2048 }
 0x14b   :  { %p983_p3 = scmp.ne.s32.totalorder %s1607_s5, %s982_s10  ;;  %p986_p4 = scmp.lt.u32.totalorder %s982_s10, %s1607_s5 }
 0x14d   :  { %p988_p5 = pnand %p986_p4, %p983_p3 }
 0x14f   :  { %991 = shalt.err (!%p988_p5)
}
 0x150   :  { %805 = dma.vmem_to_hbm [thread:$0]  %s800_s29, 2048, %s1607_s5, [#allocation12], %s1004_s30, %s1004_s30, %s1005_s6  }
 0x151   :  { %998 = dma.done.wait [#allocation4], 2048  }
 0x152   :  { %999 = vsyncadd [#allocation4], 4294965248 }
 0x153   :  { %1000 = dma.done.wait [#allocation12], 2048  }
 0x154   :  { %1001 = vsyncadd [#allocation12], 4294965248 }
 0x155   :  { %812 = vsyncpa [#allocation3], 1 }
 0x156   :  { %813 = vsyncpa [#allocation6], 1 }
 0x157   :  { %814 = vsyncpa [#allocation9], 1 }
 0x158   :  { %815 = vsyncpa [#allocation4], 1 }
 0x159   :  { %816 = vsyncpa [#allocation12], 1 }

</bundles_post_ra>
